<compile_context>
chip_gen: v7x
topology: tpu7x:2x2x1
jax: 0.10.0
libtpu: 0.0.40
codegen_flags: <defaults>
</compile_context>

<pallas_src>
import jax
import jax.numpy as jnp
from jax.experimental import pallas as pl
from jax.experimental.pallas import tpu as pltpu


_TB_MAX = 2048   # per-tile row cap: fits v5e's 16 MiB scoped VMEM with margin


def _round_up(n, m):
    return ((n + m - 1) // m) * m


def _choose_tb(B):
    """Batch-tile rows: big enough to amortize ~0.35us/step, >=2 tiles for v7x."""
    if B < 256:
        return _round_up(B, 8)                 # single tile; dispatch-dominated
    n_tiles = max(2, pl.cdiv(B, _TB_MAX))      # >=2 tiles -> both v7x TCs get work
    return min(_TB_MAX, _round_up(pl.cdiv(B, n_tiles), 8))


def _mlp_kernel(x_ref, w1_ref, b1_ref, w2_ref, b2_ref, o_ref):
    # Linear 1 + bias + ReLU   (Dropout is identity in eval mode).
    # Cast activations to the weights' dtype in-register: MXU runs at bf16 rate
    # without adding any extra HBM traffic for x.
    x = x_ref[...].astype(w1_ref.dtype)
    h = jnp.dot(x, w1_ref[...], preferred_element_type=jnp.float32)
    h = jnp.maximum(h + b1_ref[...], 0.0)       # f32 bias + ReLU (v5e-safe)
    # Linear 2 + bias + ReLU.
    y = jnp.dot(h.astype(w2_ref.dtype), w2_ref[...],
                preferred_element_type=jnp.float32)
    o_ref[...] = jnp.maximum(y + b2_ref[...], 0.0).astype(o_ref.dtype)


def prepare_params(w1, b1, w2, b2, *, matmul_dtype=jnp.bfloat16):
    """One-time parameter prep (hoisted out of the per-call path).

    Casts the matmul weights to `matmul_dtype` (bf16 by default; pass
    jnp.float32 for exact PyTorch numerics) and reshapes biases to (1, N)
    float32 rows that broadcast inside the kernel.
    """
    return (jnp.asarray(w1, matmul_dtype),
            jnp.asarray(b1, jnp.float32).reshape(1, -1),
            jnp.asarray(w2, matmul_dtype),
            jnp.asarray(b2, jnp.float32).reshape(1, -1))


def physical_property_encoder(x, params, *, tb=None, out_dtype=None):
    """Fused 2-layer MLP: Linear->ReLU->[Dropout=id]->Linear->ReLU.

    x:      (B, property_dim) float32 (or bf16)
    params: output of prepare_params(w1, b1, w2, b2)
    returns (B, output_dim) in `out_dtype` (defaults to x.dtype)
    """
    w1, b1, w2, b2 = params
    B, P = x.shape
    hidden = w1.shape[1]
    out_dim = w2.shape[1]
    out_dtype = x.dtype if out_dtype is None else out_dtype

    tb = _choose_tb(B) if tb is None else max(8, _round_up(tb, 8))
    tb = min(tb, _round_up(B, 8))
    grid = (pl.cdiv(B, tb),)   # ragged tail: Pallas clips the last writeback

    cost = pl.CostEstimate(
        flops=2 * B * (P * hidden + hidden * out_dim),
        transcendentals=0,
        bytes_accessed=int(B * P * jnp.dtype(x.dtype).itemsize
                           + B * out_dim * jnp.dtype(out_dtype).itemsize
                           + w1.size * w1.dtype.itemsize
                           + b1.size * b1.dtype.itemsize
                           + w2.size * w2.dtype.itemsize
                           + b2.size * b2.dtype.itemsize),
    )

    return pl.pallas_call(
        _mlp_kernel,
        out_shape=jax.ShapeDtypeStruct((B, out_dim), out_dtype),
        grid=grid,
        in_specs=[
            pl.BlockSpec((tb, P), lambda i: (i, 0)),        # x: streamed by tile
            pl.BlockSpec((P, hidden), lambda i: (0, 0)),    # weights: resident
            pl.BlockSpec((1, hidden), lambda i: (0, 0)),
            pl.BlockSpec((hidden, out_dim), lambda i: (0, 0)),
            pl.BlockSpec((1, out_dim), lambda i: (0, 0)),
        ],
        out_specs=pl.BlockSpec((tb, out_dim), lambda i: (i, 0)),
        compiler_params=pltpu.CompilerParams(
            dimension_semantics=("parallel",),   # megacore / v7x dual-TC split
        ),
        cost_estimate=cost,
    )(x, w1, b1, w2, b2)


def init_params(key, property_dim, hidden_dim=64, output_dim=128):
    """Deterministic PyTorch-style (Kaiming-uniform-ish) init for nn.Linear."""
    k1, k2, k3, k4 = jax.random.split(key, 4)
    bound1 = 1.0 / jnp.sqrt(property_dim)
    bound2 = 1.0 / jnp.sqrt(hidden_dim)
    w1 = jax.random.uniform(k1, (property_dim, hidden_dim), jnp.float32,
                            -bound1, bound1)
    b1 = jax.random.uniform(k2, (hidden_dim,), jnp.float32, -bound1, bound1)
    w2 = jax.random.uniform(k3, (hidden_dim, output_dim), jnp.float32,
                            -bound2, bound2)
    b2 = jax.random.uniform(k4, (output_dim,), jnp.float32, -bound2, bound2)
    return w1, b1, w2, b2


def reference_forward(x, w1, b1, w2, b2):
    """Pure-JAX f32 reference of the eval-mode forward pass."""
    h = jnp.maximum(x @ w1 + b1, 0.0)
    return jnp.maximum(h @ w2 + b2, 0.0)


if __name__ == "__main__":
    key = jax.random.PRNGKey(0)
    k_x, k_x2, k_x3, k_p = jax.random.split(key, 4)

    property_dim = 16
    hidden_dim = 64
    output_dim = 128
    w1, b1, w2, b2 = init_params(k_p, property_dim, hidden_dim, output_dim)

    # Case 1: f32 matmul params -> matches the f32 reference tightly.
    params_f32 = prepare_params(w1, b1, w2, b2, matmul_dtype=jnp.float32)
    x = jax.random.normal(k_x, (8, property_dim), dtype=jnp.float32)
    out = jax.block_until_ready(physical_property_encoder(x, params_f32))
    ref = reference_forward(x, w1, b1, w2, b2)
    assert out.shape == (8, output_dim)
    assert jnp.allclose(out, ref, atol=1e-5, rtol=1e-5)

    # Case 2: default bf16 matmul operands (f32 accumulate), ragged batch with a
    # forced small tile -> 3 grid steps, last tile partially out of bounds,
    # no wrapper pad / slice.
    params_bf16 = prepare_params(w1, b1, w2, b2)
    x2 = jax.random.normal(k_x2, (37, property_dim), dtype=jnp.float32)
    out2 = jax.block_until_ready(
        physical_property_encoder(x2, params_bf16, tb=16))
    ref2 = reference_forward(x2, w1, b1, w2, b2)
    assert out2.shape == (37, output_dim)
    assert jnp.allclose(out2, ref2, atol=3e-2, rtol=3e-2)

    # Case 3: auto-tiled batch -> >=2 grid steps (v7x megacore path) + ragged tail.
    x3 = jax.random.normal(k_x3, (300, property_dim), dtype=jnp.float32)
    out3 = jax.block_until_ready(physical_property_encoder(x3, params_bf16))
    ref3 = reference_forward(x3, w1, b1, w2, b2)
    assert out3.shape == (300, output_dim)
    assert jnp.allclose(out3, ref3, atol=3e-2, rtol=3e-2)

    print("KERNEL_OK")
</pallas_src>

<mosaic_0001>
module attributes {stable_mosaic.version = 11 : i64} {
  func.func @_mlp_kernel(%arg0: i32, %arg1: memref<8x16xf32, #tpu.memory_space<vmem>>, %arg2: memref<16x64xf32, #tpu.memory_space<vmem>>, %arg3: memref<1x64xf32, #tpu.memory_space<vmem>>, %arg4: memref<64x128xf32, #tpu.memory_space<vmem>>, %arg5: memref<1x128xf32, #tpu.memory_space<vmem>>, %arg6: memref<8x128xf32, #tpu.memory_space<vmem>>) attributes {dimension_semantics = [#tpu.dimension_semantics<parallel>], iteration_bounds = array<i64: 1>, scalar_prefetch = 0 : i64, scratch_operands = 0 : i64, tpu.core_type = #tpu.core_type<tc>, window_params = [{transform_indices = @transform_0, window_bounds = array<i64: 8, 16>}, {pipeline_mode = #tpu.pipeline_mode<synchronous>, transform_indices = @transform_1, window_bounds = array<i64: 16, 64>}, {pipeline_mode = #tpu.pipeline_mode<synchronous>, transform_indices = @transform_2, window_bounds = array<i64: 1, 64>}, {pipeline_mode = #tpu.pipeline_mode<synchronous>, transform_indices = @transform_3, window_bounds = array<i64: 64, 128>}, {pipeline_mode = #tpu.pipeline_mode<synchronous>, transform_indices = @transform_4, window_bounds = array<i64: 1, 128>}, {transform_indices = @transform_5, window_bounds = array<i64: 8, 128>}]} {
    %c0 = arith.constant 0 : index
    %c0_0 = arith.constant 0 : index
    %0 = vector.load %arg1[%c0, %c0_0] : memref<8x16xf32, #tpu.memory_space<vmem>>, vector<8x16xf32>
    %c0_1 = arith.constant 0 : index
    %c0_2 = arith.constant 0 : index
    %1 = vector.load %arg2[%c0_1, %c0_2] : memref<16x64xf32, #tpu.memory_space<vmem>>, vector<16x64xf32>
    %cst = arith.constant dense<0.000000e+00> : vector<8x64xf32>
    %2 = tpu.matmul %0, %1, %cst {dimension_numbers = #tpu.dot_dimension_numbers<[1], [0], [0], [1], [0, 0, 1, 1], [], []>} : vector<8x16xf32>, vector<16x64xf32>, vector<8x64xf32> -> vector<8x64xf32>
    %c0_3 = arith.constant 0 : index
    %c0_4 = arith.constant 0 : index
    %3 = vector.load %arg3[%c0_3, %c0_4] : memref<1x64xf32, #tpu.memory_space<vmem>>, vector<1x64xf32>
    %4 = vector.broadcast %3 : vector<1x64xf32> to vector<8x64xf32>
    %5 = arith.addf %2, %4 : vector<8x64xf32>
    %cst_5 = arith.constant 0.000000e+00 : f32
    %6 = vector.broadcast %cst_5 : f32 to vector<8x64xf32>
    %7 = arith.maximumf %5, %6 : vector<8x64xf32>
    %c0_6 = arith.constant 0 : index
    %c0_7 = arith.constant 0 : index
    %8 = vector.load %arg4[%c0_6, %c0_7] : memref<64x128xf32, #tpu.memory_space<vmem>>, vector<64x128xf32>
    %cst_8 = arith.constant dense<0.000000e+00> : vector<8x128xf32>
    %9 = tpu.matmul %7, %8, %cst_8 {dimension_numbers = #tpu.dot_dimension_numbers<[1], [0], [0], [1], [0, 0, 1, 1], [], []>} : vector<8x64xf32>, vector<64x128xf32>, vector<8x128xf32> -> vector<8x128xf32>
    %c0_9 = arith.constant 0 : index
    %c0_10 = arith.constant 0 : index
    %10 = vector.load %arg5[%c0_9, %c0_10] : memref<1x128xf32, #tpu.memory_space<vmem>>, vector<1x128xf32>
    %11 = vector.broadcast %10 : vector<1x128xf32> to vector<8x128xf32>
    %12 = arith.addf %9, %11 : vector<8x128xf32>
    %cst_11 = arith.constant 0.000000e+00 : f32
    %13 = vector.broadcast %cst_11 : f32 to vector<8x128xf32>
    %14 = arith.maximumf %12, %13 : vector<8x128xf32>
    %c0_12 = arith.constant 0 : index
    %c0_13 = arith.constant 0 : index
    %15 = vector.load %arg6[%c0_12, %c0_13] : memref<8x128xf32, #tpu.memory_space<vmem>>, vector<8x128xf32>
    tpu.vector_store %arg6[%c0_12, %c0_13], %14 {strides = array<i32>} : memref<8x128xf32, #tpu.memory_space<vmem>>, vector<8x128xf32>,
    return
  }
  func.func @transform_0(%arg0: i32) -> (i32, i32) {
    %c0_i32 = arith.constant 0 : i32
    %c0_i32_0 = arith.constant 0 : i32
    return %arg0, %c0_i32 : i32, i32
  }
  func.func @transform_1(%arg0: i32) -> (i32, i32) {
    %c0_i32 = arith.constant 0 : i32
    %c0_i32_0 = arith.constant 0 : i32
    %c0_i32_1 = arith.constant 0 : i32
    return %c0_i32, %c0_i32_0 : i32, i32
  }
  func.func @transform_2(%arg0: i32) -> (i32, i32) {
    %c0_i32 = arith.constant 0 : i32
    %c0_i32_0 = arith.constant 0 : i32
    %c0_i32_1 = arith.constant 0 : i32
    return %c0_i32, %c0_i32_0 : i32, i32
  }
  func.func @transform_3(%arg0: i32) -> (i32, i32) {
    %c0_i32 = arith.constant 0 : i32
    %c0_i32_0 = arith.constant 0 : i32
    %c0_i32_1 = arith.constant 0 : i32
    return %c0_i32, %c0_i32_0 : i32, i32
  }
  func.func @transform_4(%arg0: i32) -> (i32, i32) {
    %c0_i32 = arith.constant 0 : i32
    %c0_i32_0 = arith.constant 0 : i32
    %c0_i32_1 = arith.constant 0 : i32
    return %c0_i32, %c0_i32_0 : i32, i32
  }
  func.func @transform_5(%arg0: i32) -> (i32, i32) {
    %c0_i32 = arith.constant 0 : i32
    %c0_i32_0 = arith.constant 0 : i32
    return %arg0, %c0_i32 : i32, i32
  }
}

</mosaic_0001>

<bundles_post_ra>
// kernel: tpu_custom_call.1
= control target key start
LH: loop header
LB: loop body
LE: loop exit
PB: predicated region body
PF: predicated region fallthrough
CT: control target
= control target key end

     0   :  { %10 = vsyncpa [#allocation3], 0  ;;  %s511_s0 = inlined_call_operand.hbm [shape: f32[8,16], index: 0, kind: input, shape index: {}]   ;;  %s512_s1 = inlined_call_operand.hbm [shape: f32[16,64], index: 1, kind: input, shape index: {}]   ;;  %s513_s2 = inlined_call_operand.vmem [shape: f32[1,64], index: 2, kind: input, shape index: {}]   ;;  %s514_s3 = inlined_call_operand.hbm [shape: f32[64,128], index: 3, kind: input, shape index: {}]   ;;  %s515_s4 = inlined_call_operand.vmem [shape: f32[1,128], index: 4, kind: input, shape index: {}]   ;;  %s516_s5 = inlined_call_operand.hbm [shape: f32[8,128], index: 5, kind: output, shape index: {}]  }
   0x1   :  { %11 = vsyncpa [#allocation6], 0 }
   0x2   :  { %12 = vsyncpa [#allocation4], 0  ;;  %s412_s18 = smov [#allocation5]   ;;  %s318_s22 = scalar_lea.hbm %s512_s1, 256 }
   0x3   :  { %s28_s19 = sshll.u32 %s412_s18, 4  ;;  %p319_p0 = scmp.ne.s32.totalorder %s512_s1, %s318_s22  ;;  %s29_s19 = int_to_ptr.vmem [resolvable:$true] %s28_s19 }
   0x4   :  { %p322_p1 = scmp.lt.u32.totalorder %s318_s22, %s512_s1 }
   0x6   :  { %p324_p2 = pnand %p322_p1, %p319_p0 }
   0x8   :  { %327 = shalt.err (!%p324_p2)
}
   0x9   :  { %s328_s27 = scalar_lea.vmem %s29_s19, 256  ;;  %p333_p4 = scmp.lt.s32.totalorder %s29_s19, %s29_s19 }
   0xa   :  { %p329_p3 = scmp.ne.s32.totalorder %s29_s19, %s328_s27  ;;  %p334_p5 = scmp.lt.s32.totalorder %s328_s27, %s328_s27 }
   0xc   :  { %p335_p6 = por %p334_p5, %p333_p4 }
   0xe   :  { %p336_p7 = pnand %p335_p6, %p329_p3 }
  0x10   :  { %339 = shalt.err (!%p336_p7)
}
  0x11   :  { %s413_s28 = smov 128   ;;  %s414_s29 = smov 8  }
  0x12   :  { %34 = dma.hbm_to_vmem [thread:$0]  %s512_s1, 256, %s29_s19, [#allocation6], %s413_s28, %s413_s28, %s414_s29  }
  0x13   :  { %s415_s7 = smov [#allocation2]   ;;  %s416_s9 = smov [#allocation7]  }
  0x14   :  { %s19_s8 = sshll.u32 %s415_s7, 4  ;;  %s42_s10 = sshll.u32 %s416_s9, 4  ;;  %s20_s8 = int_to_ptr.vmem [resolvable:$true] %s19_s8  ;;  %s43_s10 = int_to_ptr.vmem [resolvable:$true] %s42_s10 }
  0x15   :  { %s340_s13 = scalar_lea.hbm %s511_s0, 128 }
  0x16   :  { %p341_p8 = scmp.ne.s32.totalorder %s511_s0, %s340_s13  ;;  %p344_p9 = scmp.lt.u32.totalorder %s340_s13, %s511_s0 }
  0x18   :  { %p346_p10 = pnand %p344_p9, %p341_p8 }
  0x1a   :  { %349 = shalt.err (!%p346_p10)
}
  0x1b   :  { %s350_s1 = scalar_lea.vmem %s20_s8, 128  ;;  %p355_p12 = scmp.lt.s32.totalorder %s20_s8, %s20_s8 }
  0x1c   :  { %p351_p11 = scmp.ne.s32.totalorder %s20_s8, %s350_s1  ;;  %p356_p13 = scmp.lt.s32.totalorder %s350_s1, %s350_s1 }
  0x1e   :  { %p357_p0 = por %p356_p13, %p355_p12 }
  0x20   :  { %p358_p1 = pnand %p357_p0, %p351_p11 }
  0x22   :  { %361 = shalt.err (!%p358_p1)
}
  0x23   :  { %22 = dma.hbm_to_vmem [thread:$0]  %s511_s0, 128, %s20_s8, [#allocation3]  }
  0x24   :  { %s362_s22 = scalar_lea.hbm %s514_s3, 1024 }
  0x25   :  { %p363_p2 = scmp.ne.s32.totalorder %s514_s3, %s362_s22  ;;  %p366_p3 = scmp.lt.u32.totalorder %s362_s22, %s514_s3 }
  0x27   :  { %p368_p4 = pnand %p366_p3, %p363_p2 }
  0x29   :  { %371 = shalt.err (!%p368_p4)
}
  0x2a   :  { %s372_s27 = scalar_lea.vmem %s43_s10, 1024  ;;  %p377_p6 = scmp.lt.s32.totalorder %s43_s10, %s43_s10 }
  0x2b   :  { %p373_p5 = scmp.ne.s32.totalorder %s43_s10, %s372_s27  ;;  %p378_p7 = scmp.lt.s32.totalorder %s372_s27, %s372_s27 }
  0x2d   :  { %p379_p8 = por %p378_p7, %p377_p6 }
  0x2f   :  { %p380_p9 = pnand %p379_p8, %p373_p5 }
  0x31   :  { %383 = shalt.err (!%p380_p9)
}
  0x32   :  { %48 = dma.hbm_to_vmem [thread:$0]  %s514_s3, 1024, %s43_s10, [#allocation6], %s413_s28, %s413_s28, %s414_s29  }
  0x33   :  { %406 = dma.done.wait [#allocation3], 128  }
  0x34   :  { %407 = vsyncadd [#allocation3], 4294967168 }
  0x35   :  { %408 = dma.done.wait [#allocation6], 1280  }
  0x36   :  { %409 = vsyncadd [#allocation6], 4294966016  ;;  %v417_v0 = vmov 0.0|0.0   ;;  %vm418_vm0 = vmmov 0   ;;  %v419_v1 = vmov 0.0   ;;  %v61_v2 = vld [vmem:[#allocation5] sm:$0xff] }
  0x37   :  { %294 = vmatprep.subr.bf16.mxu0 %v417_v0  ;;  %272 = vmatprep.mubr.msk.f32.mxu0 %vm418_vm0, %v419_v1  ;;  %v62_v3 = vld [vmem:[#allocation5 + $0x8] sm:$0xff]  ;;  %v145_v5 = vld [vmem:[#allocation7] sm:$0xff]  ;;  %v146_v6 = vld [vmem:[#allocation7 + $0x8] sm:$0xff]  ;;  %vm70_vm1 = vcmask 130048   ;;  %vm160_vm2 = vcmask 523264   ;;  %s420_s7 = smov [#allocation8]  }
  0x38   :  { %297 = vmatprep.subr.bf16.mxu1 %v417_v0  ;;  %291 = vmatprep.mubr.msk.f32.mxu1 %vm418_vm0, %v419_v1  ;;  %v295_v4 = vpack.c.bf16 %v62_v3, %v61_v2  ;;  %v147_v7 = vld [vmem:[#allocation7 + $0x10] sm:$0xff]  ;;  %v298_v8 = vpack.c.bf16 %v146_v6, %v145_v5  ;;  %v148_v9 = vld [vmem:[#allocation7 + $0x18] sm:$0xff]  ;;  %v60_v10 = vld [vmem:[#allocation2] sm:$0xff]  ;;  %s242_s8 = sshll.u32 %s420_s7, 4  ;;  %s243_s8 = int_to_ptr.vmem [resolvable:$true] %s242_s8 }
  0x39   :  { %v301_v11 = vpack.c.bf16 %v148_v9, %v147_v7  ;;  %v149_v12 = vld [vmem:[#allocation7 + $0x20] sm:$0xff]  ;;  %v150_v13 = vld [vmem:[#allocation7 + $0x28] sm:$0xff]  ;;  %v151_v15 = vld [vmem:[#allocation7 + $0x30] sm:$0xff]  ;;  %s384_s9 = scalar_lea.vmem %s243_s8, 128  ;;  %p389_p11 = scmp.lt.s32.totalorder %s243_s8, %s243_s8 }
  0x3a   :  { %296 = vmatpush3.bf16.msra.mxu0 %v295_v4  ;;  %299 = vmatpush3.bf16.msra.mxu1 %v298_v8  ;;  %v304_v14 = vpack.c.bf16 %v150_v13, %v149_v12  ;;  %v152_v16 = vld [vmem:[#allocation7 + $0x38] sm:$0xff]  ;;  %v252_v18 = vld [vmem:[%s513_s2] ss:$0 sm:$0xff]  ;;  %p385_p10 = scmp.ne.s32.totalorder %s243_s8, %s384_s9  ;;  %p390_p12 = scmp.lt.s32.totalorder %s384_s9, %s384_s9 }
  0x3b   :  { %300 = vmatprep.subr.bf16.mxu1 %v417_v0  ;;  %v307_v17 = vpack.c.bf16 %v152_v16, %v151_v15  ;;  %v254_v23 = vld [vmem:[%s515_s4] ss:$0 sm:$0xff] }
  0x3c   :  { %p391_p13 = por %p390_p12, %p389_p11 }
  0x3d   :  { %273 = vmatmul.mubr.msk.f32.vlgmr.msra.gmra.mrb[0].mxu0 %vm70_vm1, %v60_v10 }
  0x3e   :  { %302 = vmatpush3.bf16.msra.mxu1 %v301_v11  ;;  %p392_p0 = pnand %p391_p13, %p385_p10 }
  0x3f   :  { %303 = vmatprep.subr.bf16.mxu1 %v417_v0 }
  0x42   :  { %305 = vmatpush3.bf16.msra.mxu1 %v304_v14 }
  0x43   :  { %306 = vmatprep.subr.bf16.mxu1 %v417_v0 }
  0x46   :  { %308 = vmatpush3.bf16.msra.mxu1 %v307_v17 }
 0x110   :  { %v140_v19 = vpop.f32.mrb[0].mxu0 }
 0x111   :  { %v141_v20 = vadd.f32 %v252_v18, %v140_v19  ;;  %v274_v21 = vpop.f32.mrb[1].mxu0 }
 0x113   :  { %v144_v22 = vmax.f32 %v141_v20, 0.0 }
 0x115   :  { %292 = vmatmul.mubr.msk.f32.vlgmr.msra.gmra.mrb[0].mxu1 %vm160_vm2, %v144_v22 }
 0x1e8   :  { %v230_v24 = vpop.f32.mrb[0].mxu1 }
 0x1e9   :  { %v231_v25 = vadd.f32 %v254_v23, %v230_v24  ;;  %v293_v26 = vpop.f32.mrb[1].mxu1 }
 0x1eb   :  { %v234_v27 = vmax.f32 %v231_v25, 0.0 }
 0x1ed   :  { %235 = vst [vmem:[#allocation8] sm:$0xff] %v234_v27 }
 0x1ee   :  { %395 = shalt.err (!%p392_p0)
}
 0x1ef   :  { %s396_s11 = scalar_lea.hbm %s516_s5, 128 }
 0x1f0   :  { %p397_p1 = scmp.ne.s32.totalorder %s516_s5, %s396_s11  ;;  %p400_p2 = scmp.lt.u32.totalorder %s396_s11, %s516_s5 }
 0x1f2   :  { %p402_p3 = pnand %p400_p2, %p397_p1 }
 0x1f4   :  { %405 = shalt.err (!%p402_p3)
}
 0x1f5   :  { %245 = dma.vmem_to_hbm [thread:$0]  %s243_s8, 128, %s516_s5, [#allocation4]  }
 0x1f6   :  { %410 = dma.done.wait [#allocation4], 128  }
 0x1f7   :  { %411 = vsyncadd [#allocation4], 4294967168 }
 0x1f8   :  { %249 = vsyncpa [#allocation3], 1 }
 0x1f9   :  { %250 = vsyncpa [#allocation6], 1 }
 0x1fa   :  { %251 = vsyncpa [#allocation4], 1 }

</bundles_post_ra>
